<compile_context>
chip_gen: v7x
topology: tpu7x:2x2x1
jax: 0.10.0
libtpu: 0.0.40
codegen_flags: <defaults>
</compile_context>

<pallas_src>
import functools

import jax
import jax.numpy as jnp
from jax import lax
from jax.experimental import pallas as pl
from jax.experimental.pallas import tpu as pltpu

_EPS = 1e-8  # matches nn.CosineSimilarity default


def _round_up(v: int, m: int) -> int:
    return (v + m - 1) // m * m


def _cosine_sim_kernel(xn_ref, yn_ref, x_ref, y_ref, o_ref, *, eps_temp: float, last_k: int):
    # Grid indices read ONLY at the kernel top level (never inside pl.when bodies).
    k = pl.program_id(2)

    @pl.when(k == 0)
    def _init():
        o_ref[...] = jnp.zeros_like(o_ref)

    # Pairwise dot products on the MXU; bf16 operands, f32 accumulation directly into the
    # resident output block.  Contraction on the last dim of BOTH operands -> no transpose.
    o_ref[...] += lax.dot_general(
        x_ref[...], y_ref[...],
        dimension_numbers=(((1,), (1,)), ((), ())),
        preferred_element_type=jnp.float32)

    @pl.when(k == last_k)
    def _finalize():
        # xn already carries the 1/temp folding: xn = ||x|| * temp, therefore
        # dots / max(xn*yn, eps*temp) == (dots / max(||x||*||y||, eps)) / temp.
        denom = jnp.maximum(xn_ref[...] * yn_ref[...], eps_temp)   # (tm,1)*(1,tn) -> (tm,tn)
        o_ref[...] = o_ref[...] / denom                             # exact divide, once per tile


def similarity_forward(x, y, temp: float):
    """x: (B, 1, H), y: (1, Bq, H) -> (sim/temp of shape (B, Bq), pos_avg, neg_avg)."""
    xb = jnp.squeeze(x, axis=1)           # (B, H)
    yb = jnp.squeeze(y, axis=0)           # (Bq, H)
    B, H = xb.shape
    Bq = yb.shape[0]

    xb32 = xb.astype(jnp.float32)
    yb32 = yb.astype(jnp.float32)

    # Row norms computed once in f32 (tiny O((B+Bq)*H) pass).
    xn = jnp.sqrt(jnp.sum(xb32 * xb32, axis=-1, keepdims=True))    # (B, 1)
    yn = jnp.sqrt(jnp.sum(yb32 * yb32, axis=-1, keepdims=True))    # (Bq, 1)

    # Tile sizes: 128-aligned (MXU friendly on all gens), up to 512x512 output tiles and
    # tk up to 2048.  Worst-case VMEM footprint (bf16 operands, double-buffered):
    #   2 ops * 2 bufs * 512*2048*2B = 8 MiB  +  out 2 * 512*512*4B = 2 MiB  -> ~10 MiB.
    tm = min(512, _round_up(B, 128))
    tn = min(512, _round_up(Bq, 128))
    tk = min(2048, _round_up(H, 128))

    B_pad = _round_up(B, tm)
    Bq_pad = _round_up(Bq, tn)
    H_pad = _round_up(H, tk)
    gi, gj, gk = B_pad // tm, Bq_pad // tn, H_pad // tk

    # bf16 operands for the MXU (accumulation stays f32 inside the kernel).  Padded rows/cols
    # give zero dots and an eps-clamped denominator -> exactly-zero padded sim entries.
    xb_p = jnp.pad(xb32, ((0, B_pad - B), (0, H_pad - H))).astype(jnp.bfloat16)
    yb_p = jnp.pad(yb32, ((0, Bq_pad - Bq), (0, H_pad - H))).astype(jnp.bfloat16)
    xn_p = jnp.pad(xn * jnp.float32(temp), ((0, B_pad - B), (0, 0)))   # (B_pad, 1), 1/temp folded
    yn_p = jnp.pad(yn.T, ((0, 0), (0, Bq_pad - Bq)))                   # (1, Bq_pad)

    kernel = functools.partial(_cosine_sim_kernel,
                               eps_temp=float(_EPS) * float(temp),
                               last_k=gk - 1)

    sim_pad = pl.pallas_call(
        kernel,
        out_shape=jax.ShapeDtypeStruct((B_pad, Bq_pad), jnp.float32),
        grid_spec=pltpu.PrefetchScalarGridSpec(
            num_scalar_prefetch=0,
            grid=(gi, gj, gk),
            in_specs=[
                pl.BlockSpec((tm, 1), lambda i, j, k: (i, 0)),    # ||x|| * temp
                pl.BlockSpec((1, tn), lambda i, j, k: (0, j)),    # ||y|| (row layout)
                pl.BlockSpec((tm, tk), lambda i, j, k: (i, k)),   # x tile (bf16)
                pl.BlockSpec((tn, tk), lambda i, j, k: (j, k)),   # y tile (bf16, no transpose)
            ],
            out_specs=pl.BlockSpec((tm, tn), lambda i, j, k: (i, j)),
        ),
        compiler_params=pltpu.CompilerParams(
            dimension_semantics=("parallel", "parallel", "arbitrary"),
            # 48 MiB is safe on every generation (v7x has 64 MiB physical per TC) and is
            # far above the ~10 MiB worst-case footprint of the tiles above.
            vmem_limit_bytes=48 * 1024 * 1024,
        ),
    )(xn_p, yn_p, xb_p, yb_p)

    sim_scaled = sim_pad[:B, :Bq]

    # Statistics side pass (f32, O((B+Bq)*H)): pos_avg = mean of diagonal cosines,
    # neg_avg = mean of off-diagonal cosines.  Uses factorized total sum, exact whenever
    # all row norms exceed eps (per-norm clamp instead of product clamp otherwise).
    x_hat = xb32 / jnp.maximum(xn, _EPS)
    y_hat = yb32 / jnp.maximum(yn, _EPS)
    min_size = min(B, Bq)
    num_item = B * Bq
    diag_sum = jnp.sum(x_hat[:min_size] * y_hat[:min_size])
    total_sum = jnp.dot(jnp.sum(x_hat, axis=0), jnp.sum(y_hat, axis=0))
    pos_avg = diag_sum / min_size
    # NOTE: division by zero when B == Bq == 1 (same failure mode as the PyTorch module).
    neg_avg = (total_sum - diag_sum) / (num_item - min_size)
    return sim_scaled, pos_avg, neg_avg


def _reference(x, y, temp):
    xb = jnp.squeeze(x, axis=1).astype(jnp.float32)
    yb = jnp.squeeze(y, axis=0).astype(jnp.float32)
    dots = xb @ yb.T
    xn = jnp.linalg.norm(xb, axis=-1, keepdims=True)
    yn = jnp.linalg.norm(yb, axis=-1, keepdims=True)
    record = dots / jnp.maximum(xn * yn.T, _EPS)
    B, Bq = record.shape
    min_size = min(B, Bq)
    diag = jnp.sum(jnp.diagonal(record))
    pos_avg = diag / min_size
    neg_avg = (jnp.sum(record) - diag) / (B * Bq - min_size)
    return record / temp, pos_avg, neg_avg


if __name__ == "__main__":
    B, H = 8, 32
    temp = 0.05

    key = jax.random.PRNGKey(0)
    kx, ky = jax.random.split(key)
    x = jax.random.normal(kx, (B, 1, H), dtype=jnp.float32)   # (B, 1, H)
    y = jax.random.normal(ky, (1, B, H), dtype=jnp.float32)   # (1, B, H)

    sim, pos_avg, neg_avg = similarity_forward(x, y, temp)
    sim = jax.block_until_ready(sim)
    pos_avg = jax.block_until_ready(pos_avg)
    neg_avg = jax.block_until_ready(neg_avg)

    ref_sim, ref_pos, ref_neg = _reference(x, y, temp)
    assert sim.shape == (B, B)
    # Kernel uses bf16 MXU operands (per perf review) with f32 accumulation -> compare against
    # the f32 reference with bf16-level tolerances (error is amplified by 1/temp = 20).
    assert jnp.allclose(sim, ref_sim, atol=6e-2, rtol=2e-2), "sim mismatch vs reference"
    # Stats are computed in a full-f32 side pass -> tight tolerances.
    assert jnp.allclose(pos_avg, ref_pos, atol=1e-4), "pos_avg mismatch vs reference"
    assert jnp.allclose(neg_avg, ref_neg, atol=1e-4), "neg_avg mismatch vs reference"

    print("KERNEL_OK")
</pallas_src>

<mosaic_0001>
module attributes {stable_mosaic.version = 11 : i64} {
  func.func @_cosine_sim_kernel(%arg0: i32, %arg1: i32, %arg2: i32, %arg3: memref<128x1xf32, #tpu.memory_space<vmem>>, %arg4: memref<1x128xf32, #tpu.memory_space<vmem>>, %arg5: memref<128x128xbf16, #tpu.memory_space<vmem>>, %arg6: memref<128x128xbf16, #tpu.memory_space<vmem>>, %arg7: memref<128x128xf32, #tpu.memory_space<vmem>>) attributes {dimension_semantics = [#tpu.dimension_semantics<parallel>, #tpu.dimension_semantics<parallel>, #tpu.dimension_semantics<arbitrary>], iteration_bounds = array<i64: 1, 1, 1>, scalar_prefetch = 0 : i64, scratch_operands = 0 : i64, tpu.core_type = #tpu.core_type<tc>, window_params = [{transform_indices = @transform_0, window_bounds = array<i64: 128, 1>}, {transform_indices = @transform_1, window_bounds = array<i64: 1, 128>}, {transform_indices = @transform_2, window_bounds = array<i64: 128, 128>}, {transform_indices = @transform_3, window_bounds = array<i64: 128, 128>}, {transform_indices = @transform_4, window_bounds = array<i64: 128, 128>}]} {
    %c0_i32 = arith.constant 0 : i32
    %0 = arith.cmpi eq, %arg2, %c0_i32 : i32
    %1 = arith.extui %0 : i1 to i32
    %c0_i32_0 = arith.constant 0 : i32
    %2 = arith.cmpi ne, %1, %c0_i32_0 : i32
    scf.if %2 {
      %cst_10 = arith.constant 0.000000e+00 : f32
      %12 = vector.broadcast %cst_10 : f32 to vector<128x128xf32>
      %c0_11 = arith.constant 0 : index
      %c0_12 = arith.constant 0 : index
      %13 = vector.load %arg7[%c0_11, %c0_12] : memref<128x128xf32, #tpu.memory_space<vmem>>, vector<128x128xf32>
      tpu.vector_store %arg7[%c0_11, %c0_12], %12 {strides = array<i32>} : memref<128x128xf32, #tpu.memory_space<vmem>>, vector<128x128xf32>,
    } else {
    }
    %c0 = arith.constant 0 : index
    %c0_1 = arith.constant 0 : index
    %3 = vector.load %arg7[%c0, %c0_1] : memref<128x128xf32, #tpu.memory_space<vmem>>, vector<128x128xf32>
    %c0_2 = arith.constant 0 : index
    %c0_3 = arith.constant 0 : index
    %4 = vector.load %arg5[%c0_2, %c0_3] : memref<128x128xbf16, #tpu.memory_space<vmem>>, vector<128x128xbf16>
    %c0_4 = arith.constant 0 : index
    %c0_5 = arith.constant 0 : index
    %5 = vector.load %arg6[%c0_4, %c0_5] : memref<128x128xbf16, #tpu.memory_space<vmem>>, vector<128x128xbf16>
    %cst = arith.constant dense<0.000000e+00> : vector<128x128xf32>
    %6 = tpu.matmul %4, %5, %cst {dimension_numbers = #tpu.dot_dimension_numbers<[1], [1], [0], [0], [0, 0, 1, 0], [], []>} : vector<128x128xbf16>, vector<128x128xbf16>, vector<128x128xf32> -> vector<128x128xf32>
    %7 = arith.addf %3, %6 : vector<128x128xf32>
    %c0_6 = arith.constant 0 : index
    %c0_7 = arith.constant 0 : index
    %8 = vector.load %arg7[%c0_6, %c0_7] : memref<128x128xf32, #tpu.memory_space<vmem>>, vector<128x128xf32>
    tpu.vector_store %arg7[%c0_6, %c0_7], %7 {strides = array<i32>} : memref<128x128xf32, #tpu.memory_space<vmem>>, vector<128x128xf32>,
    %c0_i32_8 = arith.constant 0 : i32
    %9 = arith.cmpi eq, %arg2, %c0_i32_8 : i32
    %10 = arith.extui %9 : i1 to i32
    %c0_i32_9 = arith.constant 0 : i32
    %11 = arith.cmpi ne, %10, %c0_i32_9 : i32
    scf.if %11 {
      %c0_10 = arith.constant 0 : index
      %c0_11 = arith.constant 0 : index
      %12 = vector.load %arg3[%c0_10, %c0_11] : memref<128x1xf32, #tpu.memory_space<vmem>>, vector<128x1xf32>
      %c0_12 = arith.constant 0 : index
      %c0_13 = arith.constant 0 : index
      %13 = vector.load %arg4[%c0_12, %c0_13] : memref<1x128xf32, #tpu.memory_space<vmem>>, vector<1x128xf32>
      %14 = vector.broadcast %12 : vector<128x1xf32> to vector<128x128xf32>
      %15 = vector.broadcast %13 : vector<1x128xf32> to vector<128x128xf32>
      %16 = arith.mulf %14, %15 : vector<128x128xf32>
      %cst_14 = arith.constant 5.000000e-10 : f32
      %17 = vector.broadcast %cst_14 : f32 to vector<128x128xf32>
      %18 = arith.maximumf %16, %17 : vector<128x128xf32>
      %c0_15 = arith.constant 0 : index
      %c0_16 = arith.constant 0 : index
      %19 = vector.load %arg7[%c0_15, %c0_16] : memref<128x128xf32, #tpu.memory_space<vmem>>, vector<128x128xf32>
      %20 = arith.divf %19, %18 : vector<128x128xf32>
      %c0_17 = arith.constant 0 : index
      %c0_18 = arith.constant 0 : index
      %21 = vector.load %arg7[%c0_17, %c0_18] : memref<128x128xf32, #tpu.memory_space<vmem>>, vector<128x128xf32>
      tpu.vector_store %arg7[%c0_17, %c0_18], %20 {strides = array<i32>} : memref<128x128xf32, #tpu.memory_space<vmem>>, vector<128x128xf32>,
    } else {
    }
    return
  }
  func.func @transform_0(%arg0: i32, %arg1: i32, %arg2: i32) -> (i32, i32) {
    %c0_i32 = arith.constant 0 : i32
    %c0_i32_0 = arith.constant 0 : i32
    return %arg0, %c0_i32 : i32, i32
  }
  func.func @transform_1(%arg0: i32, %arg1: i32, %arg2: i32) -> (i32, i32) {
    %c0_i32 = arith.constant 0 : i32
    %c0_i32_0 = arith.constant 0 : i32
    return %c0_i32, %arg1 : i32, i32
  }
  func.func @transform_2(%arg0: i32, %arg1: i32, %arg2: i32) -> (i32, i32) {
    %c0_i32 = arith.constant 0 : i32
    return %arg0, %arg2 : i32, i32
  }
  func.func @transform_3(%arg0: i32, %arg1: i32, %arg2: i32) -> (i32, i32) {
    %c0_i32 = arith.constant 0 : i32
    return %arg1, %arg2 : i32, i32
  }
  func.func @transform_4(%arg0: i32, %arg1: i32, %arg2: i32) -> (i32, i32) {
    %c0_i32 = arith.constant 0 : i32
    return %arg0, %arg1 : i32, i32
  }
}

</mosaic_0001>

<bundles_post_ra>
// kernel: tpu_custom_call.1
= control target key start
LH: loop header
LB: loop body
LE: loop exit
PB: predicated region body
PF: predicated region fallthrough
CT: control target
= control target key end

     0   :  { %v690_v2 = vmov 0   ;;  %s830_s0 = inlined_call_operand.vmem [shape: f32[128,1], index: 0, kind: input, shape index: {}]   ;;  %s831_s1 = inlined_call_operand.vmem [shape: f32[1,128], index: 1, kind: input, shape index: {}]   ;;  %s832_s2 = inlined_call_operand.vmem [shape: bf16[128,128], index: 2, kind: input, shape index: {}]   ;;  %s833_s3 = inlined_call_operand.vmem [shape: bf16[128,128], index: 3, kind: input, shape index: {}]   ;;  %s834_s4 = inlined_call_operand.hbm [shape: f32[128,128], index: 4, kind: output, shape index: {}]  }
   0x1   :  { %v618_v0 = vld [vmem:[%s833_s3] sm:$0xff]   ;;  %v619_v1 = vld [vmem:[%s833_s3 + $0x8] sm:$0xff]   ;;  %617 = vset.pattern.permute.xlu1 %v690_v2  ;;  %616 = vset.pattern.permute.xlu0 %v690_v2  ;;  %v620_v3 = vld [vmem:[%s833_s3 + $0x10] sm:$0xff]  }
   0x2   :  { %563 = vmatprep.subr.bf16.mxu0 %v618_v0  ;;  %595 = vmatprep.subr.bf16.mxu1 %v618_v0  ;;  %v626_v4 = vld [vmem:[%s832_s2] sm:$0xff]   ;;  %v621_v6 = vld [vmem:[%s833_s3 + $0x18] sm:$0xff]   ;;  %v317_v7 = vld [vmem:[%s830_s0 + $0x10] sm:$0xff] }
   0x3   :  { %564 = vmatpush3.bf16.xpose.msra.mxu0 %v618_v0  ;;  %603 = vmatpush3.bf16.xpose.msra.mxu1 %v618_v0  ;;  %v627_v5 = vld [vmem:[%s832_s2 + $0x20] sm:$0xff]   ;;  %v318_v9 = vld [vmem:[%s830_s0 + $0x18] sm:$0xff]  ;;  %v316_v10 = vld [vmem:[%s830_s0 + $0x8] sm:$0xff] }
   0x4   :  { %565 = vmatprep.subr.bf16.mxu0 %v619_v1  ;;  %596 = vmatprep.subr.bf16.mxu1 %v619_v1  ;;  %v315_v8 = vld [vmem:[%s830_s0] sm:$0xff] }
   0x5   :  { %579 = vmatprep.mubr.bf16.mxu0 %v626_v4  ;;  %587 = vmatprep.mubr.bf16.mxu1 %v627_v5 }
   0x6   :  { %344 = vperm.xlu1 %617, %v317_v7   ;;  %334 = vperm.xlu0 %616, %v315_v8  }
   0xa   :  { %349 = vperm.xlu1 %617, %v318_v9   ;;  %339 = vperm.xlu0 %616, %v316_v10  }
   0xb   :  { %566 = vmatpush3.bf16.xpose.msra.mxu0 %v619_v1  ;;  %604 = vmatpush3.bf16.xpose.msra.mxu1 %v619_v1 }
   0xc   :  { %567 = vmatprep.subr.bf16.mxu0 %v620_v3  ;;  %597 = vmatprep.subr.bf16.mxu1 %v620_v3 }
  0x13   :  { %568 = vmatpush3.bf16.xpose.msra.mxu0 %v620_v3  ;;  %605 = vmatpush3.bf16.xpose.msra.mxu1 %v620_v3 }
  0x14   :  { %569 = vmatprep.subr.bf16.mxu0 %v621_v6  ;;  %598 = vmatprep.subr.bf16.mxu1 %v621_v6 }
  0x15   :  { %9 = vsyncpa [#allocation3], 0  ;;  %v320_v11 = vld [vmem:[%s830_s0 + $0x28] sm:$0xff]  ;;  %v319_v12 = vld [vmem:[%s830_s0 + $0x20] sm:$0xff] }
  0x16   :  { %v622_v13 = vld [vmem:[%s833_s3 + $0x20] sm:$0xff]   ;;  %359 = vperm.xlu1 %617, %v320_v11   ;;  %354 = vperm.xlu0 %616, %v319_v12   ;;  %v322_v14 = vld [vmem:[%s830_s0 + $0x38] sm:$0xff]  ;;  %v321_v15 = vld [vmem:[%s830_s0 + $0x30] sm:$0xff] }
  0x17   :  { %v324_v16 = vld [vmem:[%s830_s0 + $0x48] sm:$0xff]  ;;  %v323_v17 = vld [vmem:[%s830_s0 + $0x40] sm:$0xff]  ;;  %v326_v19 = vld [vmem:[%s830_s0 + $0x58] sm:$0xff] }
  0x18   :  { %v623_v18 = vld [vmem:[%s833_s3 + $0x28] sm:$0xff]   ;;  %v325_v20 = vld [vmem:[%s830_s0 + $0x50] sm:$0xff]  ;;  %v327_v22 = vld [vmem:[%s830_s0 + $0x60] sm:$0xff] }
  0x19   :  { %v328_v21 = vld [vmem:[%s830_s0 + $0x68] sm:$0xff]  ;;  %v624_v23 = vld [vmem:[%s833_s3 + $0x30] sm:$0xff]   ;;  %v330_v24 = vld [vmem:[%s830_s0 + $0x78] sm:$0xff] }
  0x1a   :  { %369 = vperm.xlu1 %617, %v322_v14   ;;  %364 = vperm.xlu0 %616, %v321_v15   ;;  %v329_v25 = vld [vmem:[%s830_s0 + $0x70] sm:$0xff]  ;;  %v625_v26 = vld [vmem:[%s833_s3 + $0x38] sm:$0xff]   ;;  %v628_v27 = vld [vmem:[%s832_s2 + $0x8] sm:$0xff]  }
  0x1b   :  { %570 = vmatpush3.bf16.xpose.msra.mxu0 %v621_v6  ;;  %606 = vmatpush3.bf16.xpose.msra.mxu1 %v621_v6  ;;  %v629_v28 = vld [vmem:[%s832_s2 + $0x28] sm:$0xff]   ;;  %v630_v29 = vld [vmem:[%s832_s2 + $0x10] sm:$0xff]   ;;  %v632_v31 = vld [vmem:[%s832_s2 + $0x18] sm:$0xff]  }
  0x1c   :  { %571 = vmatprep.subr.bf16.mxu0 %v622_v13  ;;  %599 = vmatprep.subr.bf16.mxu1 %v622_v13  ;;  %v631_v30 = vld [vmem:[%s832_s2 + $0x30] sm:$0xff]   ;;  %v633_v32 = vld [vmem:[%s832_s2 + $0x38] sm:$0xff]   ;;  %v546_v43 = vld [vmem:[%s831_s1] ss:$0 sm:$0xff]  ;;  %s691_s1 = smov [#allocation2]  }
  0x1d   :  { %s519_s2 = sshll.u32 %s691_s1, 4  ;;  %s520_s2 = int_to_ptr.vmem [resolvable:$true] %s519_s2 }
  0x1e   :  { %379 = vperm.xlu1 %617, %v324_v16   ;;  %374 = vperm.xlu0 %616, %v323_v17   ;;  %s666_s27 = scalar_lea.vmem %s520_s2, 2048  ;;  %p671_p1 = scmp.lt.s32.totalorder %s520_s2, %s520_s2 }
  0x1f   :  { %p667_p0 = scmp.ne.s32.totalorder %s520_s2, %s666_s27  ;;  %p672_p2 = scmp.lt.s32.totalorder %s666_s27, %s666_s27 }
  0x21   :  { %p673_p3 = por %p672_p2, %p671_p1 }
  0x22   :  { %389 = vperm.xlu1 %617, %v326_v19   ;;  %384 = vperm.xlu0 %616, %v325_v20  }
  0x23   :  { %572 = vmatpush3.bf16.xpose.msra.mxu0 %v622_v13  ;;  %607 = vmatpush3.bf16.xpose.msra.mxu1 %v622_v13  ;;  %p674_p4 = pnand %p673_p3, %p667_p0 }
  0x24   :  { %573 = vmatprep.subr.bf16.mxu0 %v623_v18  ;;  %600 = vmatprep.subr.bf16.mxu1 %v623_v18 }
  0x26   :  { %399 = vperm.xlu1 %617, %v328_v21   ;;  %394 = vperm.xlu0 %616, %v327_v22  }
  0x2a   :  { %409 = vperm.xlu1 %617, %v330_v24   ;;  %404 = vperm.xlu0 %616, %v329_v25  }
  0x2b   :  { %574 = vmatpush3.bf16.xpose.msra.mxu0 %v623_v18  ;;  %608 = vmatpush3.bf16.xpose.msra.mxu1 %v623_v18 }
  0x2c   :  { %575 = vmatprep.subr.bf16.mxu0 %v624_v23  ;;  %601 = vmatprep.subr.bf16.mxu1 %v624_v23 }
  0x33   :  { %576 = vmatpush3.bf16.xpose.msra.mxu0 %v624_v23  ;;  %609 = vmatpush3.bf16.xpose.msra.mxu1 %v624_v23 }
  0x34   :  { %577 = vmatprep.subr.bf16.mxu0 %v625_v26  ;;  %602 = vmatprep.subr.bf16.mxu1 %v625_v26 }
  0x3b   :  { %578 = vmatpush3.bf16.xpose.msra.mxu0 %v625_v26  ;;  %610 = vmatpush3.bf16.xpose.msra.mxu1 %v625_v26 }
  0x42   :  { %580 = vmatmul.mubr.bf16.vlgmr.msra.gmra.mrb[0].mxu0 %v628_v27  ;;  %588 = vmatmul.mubr.bf16.vlgmr.msra.gmra.mrb[0].mxu1 %v629_v28 }
  0x43   :  { %583 = vmatprep.mubr.bf16.mxu0 %v630_v29  ;;  %591 = vmatprep.mubr.bf16.mxu1 %v631_v30 }
  0x4a   :  { %584 = vmatmul.mubr.bf16.gmra.mrb[4].mxu0 %v632_v31  ;;  %592 = vmatmul.mubr.bf16.gmra.mrb[4].mxu1 %v633_v32 }
  0x85   :  { %v335_v33 = vpop.permute.xlu0 %334  ;;  %v345_v34 = vpop.permute.xlu1 %344 }
  0x86   :  { %v420_v45 = vmul.f32 %v546_v43, %v345_v34  ;;  %v418_v47 = vmul.f32 %v546_v43, %v335_v33 }
  0x88   :  { %v436_v50 = vmax.f32 %v420_v45, 5e-10  ;;  %v434_v53 = vmax.f32 %v418_v47, 5e-10 }
  0x89   :  { %v340_v35 = vpop.permute.xlu0 %339  ;;  %v350_v36 = vpop.permute.xlu1 %349 }
  0x8a   :  { %v421_v48 = vmul.f32 %v546_v43, %v350_v36  ;;  %v419_v49 = vmul.f32 %v546_v43, %v340_v35  ;;  %634 = vrcp.f32 %v436_v50 }
  0x8b   :  { %636 = vrcp.f32 %v434_v53 }
  0x8c   :  { %v437_v55 = vmax.f32 %v421_v48, 5e-10  ;;  %v435_v58 = vmax.f32 %v419_v49, 5e-10 }
  0x8e   :  { %638 = vrcp.f32 %v437_v55 }
  0x8f   :  { %640 = vrcp.f32 %v435_v58 }
  0x94   :  { %v635_v16 = vpop.eup %634 }
  0x95   :  { %v355_v37 = vpop.permute.xlu0 %354  ;;  %v360_v38 = vpop.permute.xlu1 %359 }
  0x96   :  { %v423_v51 = vmul.f32 %v546_v43, %v360_v38  ;;  %v422_v62 = vmul.f32 %v546_v43, %v355_v37  ;;  %v637_v18 = vpop.eup %636 }
  0x98   :  { %v439_v60 = vmax.f32 %v423_v51, 5e-10  ;;  %v438_v8 = vmax.f32 %v422_v62, 5e-10  ;;  %v639_v20 = vpop.eup %638 }
  0x99   :  { %v365_v39 = vpop.permute.xlu0 %364  ;;  %v370_v40 = vpop.permute.xlu1 %369 }
  0x9a   :  { %v425_v0 = vmul.f32 %v546_v43, %v370_v40  ;;  %v424_v3 = vmul.f32 %v546_v43, %v365_v39  ;;  %642 = vrcp.f32 %v439_v60  ;;  %v641_v21 = vpop.eup %640 }
  0x9c   :  { %v441_v10 = vmax.f32 %v425_v0, 5e-10  ;;  %v440_v12 = vmax.f32 %v424_v3, 5e-10 }
  0x9d   :  { %v375_v41 = vpop.permute.xlu0 %374  ;;  %v380_v42 = vpop.permute.xlu1 %379 }
  0x9e   :  { %v426_v56 = vmul.f32 %v546_v43, %v375_v41  ;;  %v427_v61 = vmul.f32 %v546_v43, %v380_v42 }
  0xa0   :  { %v442_v1 = vmax.f32 %v426_v56, 5e-10  ;;  %v443_v5 = vmax.f32 %v427_v61, 5e-10 }
  0xa1   :  { %v385_v44 = vpop.permute.xlu0 %384  ;;  %v390_v46 = vpop.permute.xlu1 %389 }
  0xa2   :  { %v428_v54 = vmul.f32 %v546_v43, %v385_v44  ;;  %v429_v59 = vmul.f32 %v546_v43, %v390_v46 }
  0xa4   :  { %v444_v63 = vmax.f32 %v428_v54, 5e-10  ;;  %v445_v4 = vmax.f32 %v429_v59, 5e-10  ;;  %v643_v24 = vpop.eup %642 }
  0xa5   :  { %v395_v52 = vpop.permute.xlu0 %394  ;;  %v400_v57 = vpop.permute.xlu1 %399 }
  0xa6   :  { %v431_v6 = vmul.f32 %v546_v43, %v400_v57  ;;  %644 = vrcp.f32 %v444_v63  ;;  %v430_v11 = vmul.f32 %v546_v43, %v395_v52 }
  0xa7   :  { %646 = vrcp.f32 %v442_v1 }
  0xa8   :  { %648 = vrcp.f32 %v445_v4  ;;  %v447_v14 = vmax.f32 %v431_v6, 5e-10  ;;  %v446_v17 = vmax.f32 %v430_v11, 5e-10 }
  0xa9   :  { %v405_v2 = vpop.permute.xlu0 %404  ;;  %v410_v7 = vpop.permute.xlu1 %409  ;;  %650 = vrcp.f32 %v443_v5 }
  0xaa   :  { %v432_v9 = vmul.f32 %v546_v43, %v405_v2  ;;  %v433_v13 = vmul.f32 %v546_v43, %v410_v7  ;;  %652 = vrcp.f32 %v438_v8 }
  0xab   :  { %654 = vrcp.f32 %v441_v10 }
  0xac   :  { %v448_v15 = vmax.f32 %v432_v9, 5e-10  ;;  %656 = vrcp.f32 %v440_v12  ;;  %v449_v19 = vmax.f32 %v433_v13, 5e-10 }
  0xad   :  { %658 = vrcp.f32 %v447_v14 }
  0xae   :  { %660 = vrcp.f32 %v448_v15 }
  0xaf   :  { %662 = vrcp.f32 %v446_v17 }
  0xb0   :  { %v645_v27 = vpop.eup %644  ;;  %664 = vrcp.f32 %v449_v19 }
  0xb1   :  { %v647_v30 = vpop.eup %646 }
  0xb2   :  { %v649_v35 = vpop.eup %648 }
  0xb3   :  { %v651_v38 = vpop.eup %650 }
  0xb4   :  { %v653_v41 = vpop.eup %652 }
  0xb5   :  { %v655_v44 = vpop.eup %654 }
  0xb6   :  { %v657_v45 = vpop.eup %656 }
  0xb7   :  { %v659_v48 = vpop.eup %658 }
  0xb8   :  { %v661_v51 = vpop.eup %660 }
  0xb9   :  { %v663_v54 = vpop.eup %662 }
  0xba   :  { %v665_v59 = vpop.eup %664 }
 0x115   :  { %v581_v22 = vpop.f32.mrb[0].mxu0  ;;  %v589_v23 = vpop.f32.mrb[0].mxu1 }
 0x116   :  { %v217_v25 = vpop.f32.mrb[1].mxu0  ;;  %v249_v26 = vpop.f32.mrb[1].mxu1  ;;  %v471_v31 = vmul.f32 %v635_v16, %v581_v22  ;;  %v487_v32 = vmul.f32 %v645_v27, %v589_v23 }
 0x117   :  { %v582_v28 = vpop.f32.mrb[2].mxu0  ;;  %v590_v29 = vpop.f32.mrb[2].mxu1  ;;  %v467_v36 = vmul.f32 %v637_v18, %v217_v25  ;;  %v483_v37 = vmul.f32 %v647_v30, %v249_v26 }
 0x118   :  { %v220_v33 = vpop.f32.mrb[3].mxu0  ;;  %v252_v34 = vpop.f32.mrb[3].mxu1  ;;  %500 = vst [vmem:[#allocation2 + $0x10] sm:$0xff] %v471_v31  ;;  %508 = vst [vmem:[#allocation2 + $0x50] sm:$0xff] %v487_v32  ;;  %v473_v39 = vmul.f32 %v639_v20, %v582_v28  ;;  %v489_v40 = vmul.f32 %v649_v35, %v590_v29 }
 0x119   :  { %498 = vst [vmem:[#allocation2] sm:$0xff] %v467_v36  ;;  %506 = vst [vmem:[#allocation2 + $0x40] sm:$0xff] %v483_v37  ;;  %v469_v42 = vmul.f32 %v641_v21, %v220_v33  ;;  %v485_v43 = vmul.f32 %v651_v38, %v252_v34 }
 0x11a   :  { %501 = vst [vmem:[#allocation2 + $0x18] sm:$0xff] %v473_v39  ;;  %509 = vst [vmem:[#allocation2 + $0x58] sm:$0xff] %v489_v40 }
 0x11b   :  { %499 = vst [vmem:[#allocation2 + $0x8] sm:$0xff] %v469_v42  ;;  %507 = vst [vmem:[#allocation2 + $0x48] sm:$0xff] %v485_v43 }
 0x11d   :  { %v585_v46 = vpop.f32.mrb[4].mxu0  ;;  %v593_v47 = vpop.f32.mrb[4].mxu1 }
 0x11e   :  { %v233_v49 = vpop.f32.mrb[5].mxu0  ;;  %v265_v50 = vpop.f32.mrb[5].mxu1  ;;  %v479_v55 = vmul.f32 %v657_v45, %v585_v46  ;;  %v495_v56 = vmul.f32 %v661_v51, %v593_v47 }
 0x11f   :  { %v586_v52 = vpop.f32.mrb[6].mxu0  ;;  %v594_v53 = vpop.f32.mrb[6].mxu1  ;;  %v475_v60 = vmul.f32 %v653_v41, %v233_v49  ;;  %v491_v61 = vmul.f32 %v663_v54, %v265_v50 }
 0x120   :  { %v236_v57 = vpop.f32.mrb[7].mxu0  ;;  %v268_v58 = vpop.f32.mrb[7].mxu1  ;;  %504 = vst [vmem:[#allocation2 + $0x30] sm:$0xff] %v479_v55  ;;  %512 = vst [vmem:[#allocation2 + $0x70] sm:$0xff] %v495_v56  ;;  %v481_v62 = vmul.f32 %v655_v44, %v586_v52  ;;  %v497_v63 = vmul.f32 %v665_v59, %v594_v53 }
 0x121   :  { %502 = vst [vmem:[#allocation2 + $0x20] sm:$0xff] %v475_v60  ;;  %510 = vst [vmem:[#allocation2 + $0x60] sm:$0xff] %v491_v61  ;;  %v477_v0 = vmul.f32 %v643_v24, %v236_v57  ;;  %v493_v1 = vmul.f32 %v659_v48, %v268_v58 }
 0x122   :  { %505 = vst [vmem:[#allocation2 + $0x38] sm:$0xff] %v481_v62  ;;  %513 = vst [vmem:[#allocation2 + $0x78] sm:$0xff] %v497_v63 }
 0x123   :  { %503 = vst [vmem:[#allocation2 + $0x28] sm:$0xff] %v477_v0  ;;  %511 = vst [vmem:[#allocation2 + $0x68] sm:$0xff] %v493_v1 }
 0x124   :  { %677 = shalt.err (!%p674_p4)
}
 0x125   :  { %s678_s30 = scalar_lea.hbm %s834_s4, 2048 }
 0x126   :  { %p679_p5 = scmp.ne.s32.totalorder %s834_s4, %s678_s30  ;;  %p682_p6 = scmp.lt.u32.totalorder %s678_s30, %s834_s4 }
 0x128   :  { %p684_p7 = pnand %p682_p6, %p679_p5 }
 0x12a   :  { %687 = shalt.err (!%p684_p7)
}
 0x12b   :  { %s692_s9 = smov 128   ;;  %s693_s10 = smov 8  }
 0x12c   :  { %525 = dma.vmem_to_hbm [thread:$0]  %s520_s2, 2048, %s834_s4, [#allocation3], %s692_s9, %s692_s9, %s693_s10  }
 0x12d   :  { %688 = dma.done.wait [#allocation3], 2048  }
 0x12e   :  { %689 = vsyncadd [#allocation3], 4294965248 }
 0x12f   :  { %529 = vsyncpa [#allocation3], 1 }

</bundles_post_ra>
